<compile_context>
chip_gen: v7x
topology: tpu7x:2x2x1
jax: 0.10.0
libtpu: 0.0.40
codegen_flags: <defaults>
</compile_context>

<pallas_src>
import jax
import jax.numpy as jnp
from jax.experimental import pallas as pl
from jax.experimental.pallas import tpu as pltpu


_FOLD = 8                         # batch rows packed per folded row (sublane count)
_MAX_BATCH_TILE_ROWS = 16384      # cap on batch rows per grid step
_TARGET_X_BLOCK_BYTES = 4 << 20   # ~4 MiB f32 x-block per step (double-buffered)


# ----------------------------------------------------------------------------
# Kernel
# ----------------------------------------------------------------------------
def _mlp_kernel(x_ref, w1_ref, b1_ref, w2_ref, b2_ref, w3_ref, b3_ref, o_ref):
    # Compute dtype for the MXU operands = weight dtype (bf16 default,
    # f32 for the exact path).  Accumulation and bias adds are always f32.
    cdt = w1_ref.dtype

    x = x_ref[...].astype(cdt)  # cast f32 -> compute dtype on the VPU (free slack)

    a1 = jnp.dot(x, w1_ref[...], preferred_element_type=jnp.float32) + b1_ref[...]
    h1 = jnp.tanh(a1.astype(cdt))   # bf16 tanh on v6e/v7x EUP; exact f32 path when cdt=f32

    a2 = jnp.dot(h1, w2_ref[...], preferred_element_type=jnp.float32) + b2_ref[...]
    h2 = jnp.tanh(a2.astype(cdt))

    o_ref[...] = (
        jnp.dot(h2, w3_ref[...], preferred_element_type=jnp.float32) + b3_ref[...]
    ).astype(o_ref.dtype)


# ----------------------------------------------------------------------------
# Tiling helpers
# ----------------------------------------------------------------------------
def _choose_batch_tile(B, in_dim, fold=_FOLD):
    """Batch rows per grid step: multiple of fold*8, VMEM-friendly, and giving
    >=2 grid steps whenever the batch allows (v7x dual-TC sharding)."""
    unit = fold * 8  # 64 batch rows = one folded (8-sublane) block
    byte_cap = max(unit, (_TARGET_X_BLOCK_BYTES // (in_dim * 4 * unit)) * unit)
    cap = min(_MAX_BATCH_TILE_ROWS, byte_cap)
    if B < 2 * unit:
        return unit
    tile = min(cap, pl.cdiv(B, 2 * unit) * unit)   # ~half the batch, rounded up
    return max(unit, tile)


def _fold_weight(w, fold, dtype):
    """[in, out] -> block-diagonal [fold*in, fold*out] (kron(I, W)); exact."""
    return jnp.kron(jnp.eye(fold, dtype=w.dtype), w).astype(dtype)


def _fold_bias(b, fold):
    """[dim] -> [1, fold*dim] f32 (one copy per folded sub-row)."""
    return jnp.tile(b.astype(jnp.float32), fold).reshape(1, -1)


# ----------------------------------------------------------------------------
# Forward pass
# ----------------------------------------------------------------------------
def meta_model_forward(x, params, *, batch_tile=None, compute_dtype=jnp.bfloat16,
                       out_dtype=None):
    """MetaModel MLP forward pass as one fused Pallas kernel.

    x:             [B, state_dim + action_dim]
    params:        dict w1,b1,w2,b2,w3,b3 with weights stored [in, out]
                   (i.e. transposed vs. torch's F.linear weight).
    batch_tile:    batch rows per grid step (multiple of 64); auto by default.
    compute_dtype: MXU operand dtype (bf16 default; None/f32 = exact path).
    out_dtype:     output dtype (default: x.dtype).
    """
    w1, b1 = params["w1"], params["b1"]
    w2, b2 = params["w2"], params["b2"]
    w3, b3 = params["w3"], params["b3"]

    B, in_dim = x.shape
    H = w1.shape[1]
    out_dim = w3.shape[1]
    fold = _FOLD

    if out_dtype is None:
        out_dtype = x.dtype
    if compute_dtype is None:
        compute_dtype = jnp.float32

    unit = fold * 8
    if batch_tile is None:
        batch_tile = _choose_batch_tile(B, in_dim)
    assert batch_tile % unit == 0, f"batch_tile must be a multiple of {unit}"

    # Pad the batch up to a whole number of tiles (padding rows are discarded).
    grid = pl.cdiv(B, batch_tile)
    B_pad = grid * batch_tile
    if B_pad != B:
        x = jnp.pad(x, ((0, B_pad - B), (0, 0)))

    # Lane-dense folded layout: [B_pad, in] -> [B_pad/fold, fold*in] is a
    # contiguous (free) reshape; block-diagonal weights keep the math exact.
    xf = x.reshape(B_pad // fold, fold * in_dim)
    w1f = _fold_weight(w1, fold, compute_dtype)
    w2f = _fold_weight(w2, fold, compute_dtype)
    w3f = _fold_weight(w3, fold, compute_dtype)
    b1f = _fold_bias(b1, fold)
    b2f = _fold_bias(b2, fold)
    b3f = _fold_bias(b3, fold)

    tile_f = batch_tile // fold
    Bf_pad = B_pad // fold
    const_map = lambda i: (0, 0)

    in_specs = [
        pl.BlockSpec((tile_f, fold * in_dim), lambda i: (i, 0)),   # x (f32 stream)
        pl.BlockSpec((fold * in_dim, fold * H), const_map),        # w1 block-diag
        pl.BlockSpec((1, fold * H), const_map),                    # b1
        pl.BlockSpec((fold * H, fold * H), const_map),             # w2 block-diag
        pl.BlockSpec((1, fold * H), const_map),                    # b2
        pl.BlockSpec((fold * H, fold * out_dim), const_map),       # w3 block-diag
        pl.BlockSpec((1, fold * out_dim), const_map),              # b3
    ]
    out_specs = pl.BlockSpec((tile_f, fold * out_dim), lambda i: (i, 0))

    out_f = pl.pallas_call(
        _mlp_kernel,
        out_shape=jax.ShapeDtypeStruct((Bf_pad, fold * out_dim), out_dtype),
        grid_spec=pltpu.PrefetchScalarGridSpec(
            num_scalar_prefetch=0,
            grid=(grid,),
            in_specs=in_specs,
            out_specs=out_specs,
        ),
        compiler_params=pltpu.CompilerParams(
            dimension_semantics=("parallel",),
            vmem_limit_bytes=32 * 1024 * 1024,
        ),
    )(xf, w1f, b1f, w2f, b2f, w3f, b3f)

    # Un-fold (contiguous reshape) and drop padding rows.
    return out_f.reshape(B_pad, out_dim)[:B]


# ----------------------------------------------------------------------------
# Parameter init (matches MetaModel.init_parameters) and pure-JAX reference
# ----------------------------------------------------------------------------
def init_meta_model_params(key, state_dim, action_dim, hidden_size):
    """weights ~ N(0, 0.02), biases = 0.  Weights stored transposed [in, out]."""
    in_dim = state_dim + action_dim
    k1, k2, k3 = jax.random.split(key, 3)
    return {
        "w1": 0.02 * jax.random.normal(k1, (in_dim, hidden_size), jnp.float32),
        "b1": jnp.zeros((hidden_size,), jnp.float32),
        "w2": 0.02 * jax.random.normal(k2, (hidden_size, hidden_size), jnp.float32),
        "b2": jnp.zeros((hidden_size,), jnp.float32),
        "w3": 0.02 * jax.random.normal(k3, (hidden_size, state_dim), jnp.float32),
        "b3": jnp.zeros((state_dim,), jnp.float32),
    }


def _reference_forward(x, params):
    hp = jax.lax.Precision.HIGHEST
    h1 = jnp.tanh(jnp.dot(x, params["w1"], precision=hp) + params["b1"])
    h2 = jnp.tanh(jnp.dot(h1, params["w2"], precision=hp) + params["b2"])
    return jnp.dot(h2, params["w3"], precision=hp) + params["b3"]


# ----------------------------------------------------------------------------
# Demo / correctness check
# ----------------------------------------------------------------------------
if __name__ == "__main__":
    # Shapes consistent with the module: state_dim=16, action_dim=16,
    # hidden_size=32, batch=8.
    state_dim, action_dim, hidden_size = 16, 16, 32
    batch = 8

    key = jax.random.PRNGKey(0)
    k_params, k_x, k_x2 = jax.random.split(key, 3)

    params = init_meta_model_params(k_params, state_dim, action_dim, hidden_size)
    x = jax.random.normal(k_x, (batch, state_dim + action_dim), jnp.float32)
    ref = _reference_forward(x, params)

    # 1) Exact f32 path: must match the PyTorch-equivalent reference tightly.
    out_f32 = jax.block_until_ready(
        meta_model_forward(x, params, compute_dtype=None))
    assert out_f32.shape == (batch, state_dim)
    assert out_f32.dtype == jnp.float32
    assert jnp.allclose(out_f32, ref, atol=1e-4, rtol=1e-4)

    # 2) Default path (bf16 MXU operands / tanh, f32 accumulate + bias add).
    out_bf16 = jax.block_until_ready(meta_model_forward(x, params))
    assert out_bf16.shape == (batch, state_dim)
    assert out_bf16.dtype == jnp.float32
    assert jnp.allclose(out_bf16, ref, atol=2e-3, rtol=5e-2)

    # 3) Larger batch exercising the tiled / pipelined path.
    big_b = 256
    x_big = jax.random.normal(k_x2, (big_b, state_dim + action_dim), jnp.float32)
    ref_big = _reference_forward(x_big, params)

    out_big_auto = jax.block_until_ready(meta_model_forward(x_big, params))
    assert out_big_auto.shape == (big_b, state_dim)
    assert jnp.allclose(out_big_auto, ref_big, atol=2e-3, rtol=5e-2)

    out_big_t64 = jax.block_until_ready(
        meta_model_forward(x_big, params, batch_tile=64))  # grid = 4 steps
    assert out_big_t64.shape == (big_b, state_dim)
    assert jnp.allclose(out_big_t64, ref_big, atol=2e-3, rtol=5e-2)

    # 4) Batch not divisible by the tile (exercises the padding path).
    odd_b = 100
    x_odd = jax.random.normal(k_x2, (odd_b, state_dim + action_dim), jnp.float32)
    out_odd = jax.block_until_ready(meta_model_forward(x_odd, params))
    assert out_odd.shape == (odd_b, state_dim)
    assert jnp.allclose(out_odd, _reference_forward(x_odd, params),
                        atol=2e-3, rtol=5e-2)

    print("KERNEL_OK")
</pallas_src>

<mosaic_0001>
module attributes {stable_mosaic.version = 11 : i64} {
  func.func @_mlp_kernel(%arg0: i32, %arg1: memref<8x256xf32, #tpu.memory_space<vmem>>, %arg2: memref<256x256xf32, #tpu.memory_space<vmem>>, %arg3: memref<1x256xf32, #tpu.memory_space<vmem>>, %arg4: memref<256x256xf32, #tpu.memory_space<vmem>>, %arg5: memref<1x256xf32, #tpu.memory_space<vmem>>, %arg6: memref<256x128xf32, #tpu.memory_space<vmem>>, %arg7: memref<1x128xf32, #tpu.memory_space<vmem>>, %arg8: memref<8x128xf32, #tpu.memory_space<vmem>>) attributes {dimension_semantics = [#tpu.dimension_semantics<parallel>], iteration_bounds = array<i64: 1>, scalar_prefetch = 0 : i64, scratch_operands = 0 : i64, tpu.core_type = #tpu.core_type<tc>, window_params = [{transform_indices = @transform_0, window_bounds = array<i64: 8, 256>}, {pipeline_mode = #tpu.pipeline_mode<synchronous>, transform_indices = @transform_1, window_bounds = array<i64: 256, 256>}, {pipeline_mode = #tpu.pipeline_mode<synchronous>, transform_indices = @transform_2, window_bounds = array<i64: 1, 256>}, {pipeline_mode = #tpu.pipeline_mode<synchronous>, transform_indices = @transform_3, window_bounds = array<i64: 256, 256>}, {pipeline_mode = #tpu.pipeline_mode<synchronous>, transform_indices = @transform_4, window_bounds = array<i64: 1, 256>}, {pipeline_mode = #tpu.pipeline_mode<synchronous>, transform_indices = @transform_5, window_bounds = array<i64: 256, 128>}, {pipeline_mode = #tpu.pipeline_mode<synchronous>, transform_indices = @transform_6, window_bounds = array<i64: 1, 128>}, {transform_indices = @transform_7, window_bounds = array<i64: 8, 128>}]} {
    %c0 = arith.constant 0 : index
    %c0_0 = arith.constant 0 : index
    %0 = vector.load %arg1[%c0, %c0_0] : memref<8x256xf32, #tpu.memory_space<vmem>>, vector<8x256xf32>
    %c0_1 = arith.constant 0 : index
    %c0_2 = arith.constant 0 : index
    %1 = vector.load %arg2[%c0_1, %c0_2] : memref<256x256xf32, #tpu.memory_space<vmem>>, vector<256x256xf32>
    %cst = arith.constant dense<0.000000e+00> : vector<8x256xf32>
    %2 = tpu.matmul %0, %1, %cst {dimension_numbers = #tpu.dot_dimension_numbers<[1], [0], [0], [1], [0, 0, 1, 1], [], []>} : vector<8x256xf32>, vector<256x256xf32>, vector<8x256xf32> -> vector<8x256xf32>
    %c0_3 = arith.constant 0 : index
    %c0_4 = arith.constant 0 : index
    %3 = vector.load %arg3[%c0_3, %c0_4] : memref<1x256xf32, #tpu.memory_space<vmem>>, vector<1x256xf32>
    %4 = vector.broadcast %3 : vector<1x256xf32> to vector<8x256xf32>
    %5 = arith.addf %2, %4 : vector<8x256xf32>
    %6 = math.tanh %5 : vector<8x256xf32>
    %c0_5 = arith.constant 0 : index
    %c0_6 = arith.constant 0 : index
    %7 = vector.load %arg4[%c0_5, %c0_6] : memref<256x256xf32, #tpu.memory_space<vmem>>, vector<256x256xf32>
    %cst_7 = arith.constant dense<0.000000e+00> : vector<8x256xf32>
    %8 = tpu.matmul %6, %7, %cst_7 {dimension_numbers = #tpu.dot_dimension_numbers<[1], [0], [0], [1], [0, 0, 1, 1], [], []>} : vector<8x256xf32>, vector<256x256xf32>, vector<8x256xf32> -> vector<8x256xf32>
    %c0_8 = arith.constant 0 : index
    %c0_9 = arith.constant 0 : index
    %9 = vector.load %arg5[%c0_8, %c0_9] : memref<1x256xf32, #tpu.memory_space<vmem>>, vector<1x256xf32>
    %10 = vector.broadcast %9 : vector<1x256xf32> to vector<8x256xf32>
    %11 = arith.addf %8, %10 : vector<8x256xf32>
    %12 = math.tanh %11 : vector<8x256xf32>
    %c0_10 = arith.constant 0 : index
    %c0_11 = arith.constant 0 : index
    %13 = vector.load %arg6[%c0_10, %c0_11] : memref<256x128xf32, #tpu.memory_space<vmem>>, vector<256x128xf32>
    %cst_12 = arith.constant dense<0.000000e+00> : vector<8x128xf32>
    %14 = tpu.matmul %12, %13, %cst_12 {dimension_numbers = #tpu.dot_dimension_numbers<[1], [0], [0], [1], [0, 0, 1, 1], [], []>} : vector<8x256xf32>, vector<256x128xf32>, vector<8x128xf32> -> vector<8x128xf32>
    %c0_13 = arith.constant 0 : index
    %c0_14 = arith.constant 0 : index
    %15 = vector.load %arg7[%c0_13, %c0_14] : memref<1x128xf32, #tpu.memory_space<vmem>>, vector<1x128xf32>
    %16 = vector.broadcast %15 : vector<1x128xf32> to vector<8x128xf32>
    %17 = arith.addf %14, %16 : vector<8x128xf32>
    %c0_15 = arith.constant 0 : index
    %c0_16 = arith.constant 0 : index
    %18 = vector.load %arg8[%c0_15, %c0_16] : memref<8x128xf32, #tpu.memory_space<vmem>>, vector<8x128xf32>
    tpu.vector_store %arg8[%c0_15, %c0_16], %17 {strides = array<i32>} : memref<8x128xf32, #tpu.memory_space<vmem>>, vector<8x128xf32>,
    return
  }
  func.func @transform_0(%arg0: i32) -> (i32, i32) {
    %c0_i32 = arith.constant 0 : i32
    %c0_i32_0 = arith.constant 0 : i32
    return %arg0, %c0_i32 : i32, i32
  }
  func.func @transform_1(%arg0: i32) -> (i32, i32) {
    %c0_i32 = arith.constant 0 : i32
    %c0_i32_0 = arith.constant 0 : i32
    %c0_i32_1 = arith.constant 0 : i32
    return %c0_i32, %c0_i32_0 : i32, i32
  }
  func.func @transform_2(%arg0: i32) -> (i32, i32) {
    %c0_i32 = arith.constant 0 : i32
    %c0_i32_0 = arith.constant 0 : i32
    %c0_i32_1 = arith.constant 0 : i32
    return %c0_i32, %c0_i32_0 : i32, i32
  }
  func.func @transform_3(%arg0: i32) -> (i32, i32) {
    %c0_i32 = arith.constant 0 : i32
    %c0_i32_0 = arith.constant 0 : i32
    %c0_i32_1 = arith.constant 0 : i32
    return %c0_i32, %c0_i32_0 : i32, i32
  }
  func.func @transform_4(%arg0: i32) -> (i32, i32) {
    %c0_i32 = arith.constant 0 : i32
    %c0_i32_0 = arith.constant 0 : i32
    %c0_i32_1 = arith.constant 0 : i32
    return %c0_i32, %c0_i32_0 : i32, i32
  }
  func.func @transform_5(%arg0: i32) -> (i32, i32) {
    %c0_i32 = arith.constant 0 : i32
    %c0_i32_0 = arith.constant 0 : i32
    %c0_i32_1 = arith.constant 0 : i32
    return %c0_i32, %c0_i32_0 : i32, i32
  }
  func.func @transform_6(%arg0: i32) -> (i32, i32) {
    %c0_i32 = arith.constant 0 : i32
    %c0_i32_0 = arith.constant 0 : i32
    %c0_i32_1 = arith.constant 0 : i32
    return %c0_i32, %c0_i32_0 : i32, i32
  }
  func.func @transform_7(%arg0: i32) -> (i32, i32) {
    %c0_i32 = arith.constant 0 : i32
    %c0_i32_0 = arith.constant 0 : i32
    return %arg0, %c0_i32 : i32, i32
  }
}

</mosaic_0001>

<bundles_post_ra>
// kernel: tpu_custom_call.1
= control target key start
LH: loop header
LB: loop body
LE: loop exit
PB: predicated region body
PF: predicated region fallthrough
CT: control target
= control target key end

     0   :  { %12 = vsyncpa [#allocation3], 0  ;;  %s962_s0 = inlined_call_operand.hbm [shape: f32[8,256], index: 0, kind: input, shape index: {}]   ;;  %s963_s1 = inlined_call_operand.hbm [shape: f32[256,256], index: 1, kind: input, shape index: {}]   ;;  %s964_s2 = inlined_call_operand.vmem [shape: f32[1,256], index: 2, kind: input, shape index: {}]   ;;  %s965_s3 = inlined_call_operand.hbm [shape: f32[256,256], index: 3, kind: input, shape index: {}]   ;;  %s966_s4 = inlined_call_operand.vmem [shape: f32[1,256], index: 4, kind: input, shape index: {}]   ;;  %s967_s5 = inlined_call_operand.hbm [shape: f32[256,128], index: 5, kind: input, shape index: {}]   ;;  %s968_s6 = inlined_call_operand.vmem [shape: f32[1,128], index: 6, kind: input, shape index: {}]   ;;  %s969_s7 = inlined_call_operand.hbm [shape: f32[8,128], index: 7, kind: output, shape index: {}]  }
   0x1   :  { %13 = vsyncpa [#allocation6], 0 }
   0x2   :  { %14 = vsyncpa [#allocation9], 0 }
   0x3   :  { %15 = vsyncpa [#allocation4], 0  ;;  %s838_s24 = smov [#allocation5]   ;;  %s720_s28 = scalar_lea.hbm %s963_s1, 8192 }
   0x4   :  { %s31_s25 = sshll.u32 %s838_s24, 4  ;;  %p721_p0 = scmp.ne.s32.totalorder %s963_s1, %s720_s28  ;;  %s32_s25 = int_to_ptr.vmem [resolvable:$true] %s31_s25 }
   0x5   :  { %p724_p1 = scmp.lt.u32.totalorder %s720_s28, %s963_s1 }
   0x7   :  { %p726_p2 = pnand %p724_p1, %p721_p0 }
   0x9   :  { %729 = shalt.err (!%p726_p2)
}
   0xa   :  { %s730_s10 = scalar_lea.vmem %s32_s25, 8192  ;;  %p735_p4 = scmp.lt.s32.totalorder %s32_s25, %s32_s25 }
   0xb   :  { %p731_p3 = scmp.ne.s32.totalorder %s32_s25, %s730_s10  ;;  %p736_p5 = scmp.lt.s32.totalorder %s730_s10, %s730_s10 }
   0xd   :  { %p737_p6 = por %p736_p5, %p735_p4 }
   0xf   :  { %p738_p7 = pnand %p737_p6, %p731_p3 }
  0x11   :  { %741 = shalt.err (!%p738_p7)
}
  0x12   :  { %s839_s11 = smov 256   ;;  %s840_s12 = smov 16  }
  0x13   :  { %37 = dma.hbm_to_vmem [thread:$0]  %s963_s1, 8192, %s32_s25, [#allocation6], %s839_s11, %s839_s11, %s840_s12  }
  0x14   :  { %s841_s15 = smov [#allocation2]   ;;  %s842_s17 = smov [#allocation7]  }
  0x15   :  { %s22_s16 = sshll.u32 %s841_s15, 4  ;;  %s45_s18 = sshll.u32 %s842_s17, 4  ;;  %s23_s16 = int_to_ptr.vmem [resolvable:$true] %s22_s16  ;;  %s46_s18 = int_to_ptr.vmem [resolvable:$true] %s45_s18 }
  0x16   :  { %s742_s21 = scalar_lea.hbm %s962_s0, 256 }
  0x17   :  { %p743_p8 = scmp.ne.s32.totalorder %s962_s0, %s742_s21  ;;  %p746_p9 = scmp.lt.u32.totalorder %s742_s21, %s962_s0 }
  0x19   :  { %p748_p10 = pnand %p746_p9, %p743_p8 }
  0x1b   :  { %751 = shalt.err (!%p748_p10)
}
  0x1c   :  { %s752_s1 = scalar_lea.vmem %s23_s16, 256  ;;  %p757_p12 = scmp.lt.s32.totalorder %s23_s16, %s23_s16 }
  0x1d   :  { %p753_p11 = scmp.ne.s32.totalorder %s23_s16, %s752_s1  ;;  %p758_p13 = scmp.lt.s32.totalorder %s752_s1, %s752_s1 }
  0x1f   :  { %p759_p0 = por %p758_p13, %p757_p12 }
  0x21   :  { %p760_p1 = pnand %p759_p0, %p753_p11 }
  0x23   :  { %763 = shalt.err (!%p760_p1)
}
  0x24   :  { %25 = dma.hbm_to_vmem [thread:$0]  %s962_s0, 256, %s23_s16, [#allocation3]  }
  0x25   :  { %s764_s30 = scalar_lea.hbm %s965_s3, 8192 }
  0x26   :  { %p765_p2 = scmp.ne.s32.totalorder %s965_s3, %s764_s30  ;;  %p768_p3 = scmp.lt.u32.totalorder %s764_s30, %s965_s3 }
  0x28   :  { %p770_p4 = pnand %p768_p3, %p765_p2 }
  0x2a   :  { %773 = shalt.err (!%p770_p4)
}
  0x2b   :  { %s774_s14 = scalar_lea.vmem %s46_s18, 8192  ;;  %p779_p6 = scmp.lt.s32.totalorder %s46_s18, %s46_s18 }
  0x2c   :  { %p775_p5 = scmp.ne.s32.totalorder %s46_s18, %s774_s14  ;;  %p780_p7 = scmp.lt.s32.totalorder %s774_s14, %s774_s14 }
  0x2e   :  { %p781_p8 = por %p780_p7, %p779_p6 }
  0x30   :  { %p782_p9 = pnand %p781_p8, %p775_p5 }
  0x32   :  { %785 = shalt.err (!%p782_p9)
}
  0x33   :  { %51 = dma.hbm_to_vmem [thread:$0]  %s965_s3, 8192, %s46_s18, [#allocation6], %s839_s11, %s839_s11, %s840_s12  }
  0x34   :  { %s843_s16 = smov [#allocation8]   ;;  %s786_s21 = scalar_lea.hbm %s967_s5, 4096 }
  0x35   :  { %s59_s17 = sshll.u32 %s843_s16, 4  ;;  %p787_p10 = scmp.ne.s32.totalorder %s967_s5, %s786_s21  ;;  %s60_s17 = int_to_ptr.vmem [resolvable:$true] %s59_s17 }
  0x36   :  { %p790_p11 = scmp.lt.u32.totalorder %s786_s21, %s967_s5 }
  0x38   :  { %p792_p12 = pnand %p790_p11, %p787_p10 }
  0x3a   :  { %795 = shalt.err (!%p792_p12)
}
  0x3b   :  { %s796_s1 = scalar_lea.vmem %s60_s17, 4096  ;;  %p801_p0 = scmp.lt.s32.totalorder %s60_s17, %s60_s17 }
  0x3c   :  { %p797_p13 = scmp.ne.s32.totalorder %s60_s17, %s796_s1  ;;  %p802_p1 = scmp.lt.s32.totalorder %s796_s1, %s796_s1 }
  0x3e   :  { %p803_p2 = por %p802_p1, %p801_p0 }
  0x40   :  { %p804_p3 = pnand %p803_p2, %p797_p13 }
  0x42   :  { %807 = shalt.err (!%p804_p3)
}
  0x43   :  { %s844_s3 = smov 128   ;;  %s845_s11 = smov 8  }
  0x44   :  { %65 = dma.hbm_to_vmem [thread:$0]  %s967_s5, 4096, %s60_s17, [#allocation9], %s844_s3, %s844_s3, %s845_s11  }
  0x45   :  { %830 = dma.done.wait [#allocation3], 256  }
  0x46   :  { %831 = vsyncadd [#allocation3], 4294967040 }
  0x47   :  { %832 = dma.done.wait [#allocation6], 16384  }
  0x48   :  { %833 = vsyncadd [#allocation6], 4294950912 }
  0x49   :  { %834 = dma.done.wait [#allocation9], 4096  }
  0x4a   :  { %835 = vsyncadd [#allocation9], 4294963200  ;;  %v83_v0 = vld [vmem:[#allocation5 + $0x8] sm:$0xff]  ;;  %v85_v1 = vld [vmem:[#allocation5 + $0x18] sm:$0xff]  ;;  %s846_s30 = smov [#allocation10]  }
  0x4b   :  { %v82_v2 = vld [vmem:[#allocation5] sm:$0xff]  ;;  %v543_v3 = vpack.c.bf16 %v85_v1, %v83_v0  ;;  %v84_v4 = vld [vmem:[#allocation5 + $0x10] sm:$0xff]  ;;  %v87_v5 = vld [vmem:[#allocation5 + $0x28] sm:$0xff] }
  0x4c   :  { %v89_v6 = vld [vmem:[#allocation5 + $0x38] sm:$0xff]  ;;  %v545_v7 = vpack.c.bf16 %v84_v4, %v82_v2  ;;  %v86_v9 = vld [vmem:[#allocation5 + $0x20] sm:$0xff]  ;;  %v88_v10 = vld [vmem:[#allocation5 + $0x30] sm:$0xff] }
  0x4d   :  { %v547_v8 = vpack.c.bf16 %v89_v6, %v87_v5  ;;  %v91_v11 = vld [vmem:[#allocation5 + $0x48] sm:$0xff]  ;;  %544 = vmatprep.subr.bf16.mxu0 %v543_v3  ;;  %v93_v12 = vld [vmem:[#allocation5 + $0x58] sm:$0xff]  ;;  %v549_v13 = vpack.c.bf16 %v88_v10, %v86_v9  ;;  %v90_v15 = vld [vmem:[#allocation5 + $0x40] sm:$0xff] }
  0x4e   :  { %546 = vmatpush1.bf16.msra.mxu0 %v545_v7  ;;  %v551_v14 = vpack.c.bf16 %v93_v12, %v91_v11  ;;  %v92_v16 = vld [vmem:[#allocation5 + $0x50] sm:$0xff]  ;;  %v95_v17 = vld [vmem:[#allocation5 + $0x68] sm:$0xff]  ;;  %v97_v18 = vld [vmem:[#allocation5 + $0x78] sm:$0xff] }
  0x4f   :  { %548 = vmatprep.subr.bf16.mxu0 %v547_v8  ;;  %v553_v19 = vpack.c.bf16 %v92_v16, %v90_v15  ;;  %v555_v20 = vpack.c.bf16 %v97_v18, %v95_v17  ;;  %v94_v21 = vld [vmem:[#allocation5 + $0x60] sm:$0xff]  ;;  %v96_v22 = vld [vmem:[#allocation5 + $0x70] sm:$0xff]  ;;  %v99_v23 = vld [vmem:[#allocation5 + $0x88] sm:$0xff] }
  0x50   :  { %v101_v24 = vld [vmem:[#allocation5 + $0x98] sm:$0xff]  ;;  %v557_v25 = vpack.c.bf16 %v96_v22, %v94_v21  ;;  %v98_v27 = vld [vmem:[#allocation5 + $0x80] sm:$0xff]  ;;  %v100_v28 = vld [vmem:[#allocation5 + $0x90] sm:$0xff] }
  0x51   :  { %v559_v26 = vpack.c.bf16 %v101_v24, %v99_v23  ;;  %v103_v29 = vld [vmem:[#allocation5 + $0xa8] sm:$0xff]  ;;  %v105_v30 = vld [vmem:[#allocation5 + $0xb8] sm:$0xff]  ;;  %v561_v31 = vpack.c.bf16 %v100_v28, %v98_v27  ;;  %v102_v33 = vld [vmem:[#allocation5 + $0xa0] sm:$0xff] }
  0x52   :  { %550 = vmatpush1.bf16.msra.mxu0 %v549_v13  ;;  %v563_v32 = vpack.c.bf16 %v105_v30, %v103_v29  ;;  %v104_v34 = vld [vmem:[#allocation5 + $0xb0] sm:$0xff]  ;;  %v107_v35 = vld [vmem:[#allocation5 + $0xc8] sm:$0xff]  ;;  %v109_v36 = vld [vmem:[#allocation5 + $0xd8] sm:$0xff] }
  0x53   :  { %552 = vmatprep.subr.bf16.mxu0 %v551_v14  ;;  %v565_v37 = vpack.c.bf16 %v104_v34, %v102_v33  ;;  %v106_v38 = vld [vmem:[#allocation5 + $0xc0] sm:$0xff]  ;;  %v108_v39 = vld [vmem:[#allocation5 + $0xd0] sm:$0xff]  ;;  %v567_v40 = vpack.c.bf16 %v109_v36, %v107_v35  ;;  %v111_v41 = vld [vmem:[#allocation5 + $0xe8] sm:$0xff] }
  0x54   :  { %v113_v42 = vld [vmem:[#allocation5 + $0xf8] sm:$0xff]  ;;  %v232_v44 = vld [vmem:[#allocation7 + $0x8] sm:$0xff]  ;;  %v231_v46 = vld [vmem:[#allocation7] sm:$0xff]  ;;  %v569_v51 = vpack.c.bf16 %v108_v39, %v106_v38 }
  0x55   :  { %v81_v43 = vld [vmem:[#allocation2 + $0x8] sm:$0xff]  ;;  %v233_v48 = vld [vmem:[#allocation7 + $0x10] sm:$0xff]  ;;  %v236_v49 = vld [vmem:[#allocation7 + $0x28] sm:$0xff]  ;;  %v571_v57 = vpack.c.bf16 %v113_v42, %v111_v41 }
  0x56   :  { %554 = vmatpush1.bf16.msra.mxu0 %v553_v19  ;;  %222 = vmatprep.mubr.f32.mxu0 %v81_v43  ;;  %v234_v45 = vld [vmem:[#allocation7 + $0x18] sm:$0xff]  ;;  %v609_v52 = vpack.c.bf16 %v233_v48, %v231_v46  ;;  %v235_v54 = vld [vmem:[#allocation7 + $0x20] sm:$0xff]  ;;  %v237_v55 = vld [vmem:[#allocation7 + $0x30] sm:$0xff] }
  0x57   :  { %556 = vmatprep.subr.bf16.mxu0 %v555_v20  ;;  %v607_v47 = vpack.c.bf16 %v234_v45, %v232_v44  ;;  %v238_v50 = vld [vmem:[#allocation7 + $0x38] sm:$0xff]  ;;  %v240_v56 = vld [vmem:[#allocation7 + $0x48] sm:$0xff]  ;;  %v110_v58 = vld [vmem:[#allocation5 + $0xe0] sm:$0xff]  ;;  %v613_v63 = vpack.c.bf16 %v237_v55, %v235_v54 }
  0x58   :  { %v611_v53 = vpack.c.bf16 %v238_v50, %v236_v49  ;;  %v112_v59 = vld [vmem:[#allocation5 + $0xf0] sm:$0xff]  ;;  %v242_v60 = vld [vmem:[#allocation7 + $0x58] sm:$0xff]  ;;  %v115_v61 = vld [vmem:[#allocation5 + $0x108] sm:$0xff] }
  0x59   :  { %608 = vmatprep.subr.bf16.mxu1 %v607_v47  ;;  %v117_v62 = vld [vmem:[#allocation5 + $0x118] sm:$0xff]  ;;  %v615_v0 = vpack.c.bf16 %v242_v60, %v240_v56  ;;  %v239_v1 = vld [vmem:[#allocation7 + $0x40] sm:$0xff]  ;;  %v241_v2 = vld [vmem:[#allocation7 + $0x50] sm:$0xff]  ;;  %v573_v3 = vpack.c.bf16 %v112_v59, %v110_v58 }
  0x5a   :  { %558 = vmatpush1.bf16.msra.mxu0 %v557_v25  ;;  %610 = vmatpush1.bf16.msra.mxu1 %v609_v52  ;;  %v244_v4 = vld [vmem:[#allocation7 + $0x68] sm:$0xff]  ;;  %v246_v5 = vld [vmem:[#allocation7 + $0x78] sm:$0xff]  ;;  %v575_v6 = vpack.c.bf16 %v117_v62, %v115_v61  ;;  %v114_v7 = vld [vmem:[#allocation5 + $0x100] sm:$0xff]  ;;  %v617_v11 = vpack.c.bf16 %v241_v2, %v239_v1 }
  0x5b   :  { %560 = vmatprep.subr.bf16.mxu0 %v559_v26  ;;  %612 = vmatprep.subr.bf16.mxu1 %v611_v53  ;;  %v116_v8 = vld [vmem:[#allocation5 + $0x110] sm:$0xff]  ;;  %v119_v9 = vld [vmem:[#allocation5 + $0x128] sm:$0xff]  ;;  %v121_v10 = vld [vmem:[#allocation5 + $0x138] sm:$0xff]  ;;  %v619_v12 = vpack.c.bf16 %v246_v5, %v244_v4 }
  0x5c   :  { %v243_v13 = vld [vmem:[#allocation7 + $0x60] sm:$0xff]  ;;  %v245_v14 = vld [vmem:[#allocation7 + $0x70] sm:$0xff]  ;;  %v577_v15 = vpack.c.bf16 %v116_v8, %v114_v7  ;;  %v248_v16 = vld [vmem:[#allocation7 + $0x88] sm:$0xff]  ;;  %v579_v18 = vpack.c.bf16 %v121_v10, %v119_v9 }
  0x5d   :  { %v250_v17 = vld [vmem:[#allocation7 + $0x98] sm:$0xff]  ;;  %v118_v19 = vld [vmem:[#allocation5 + $0x120] sm:$0xff]  ;;  %v120_v20 = vld [vmem:[#allocation5 + $0x130] sm:$0xff]  ;;  %v621_v23 = vpack.c.bf16 %v245_v14, %v243_v13 }
  0x5e   :  { %562 = vmatpush1.bf16.msra.mxu0 %v561_v31  ;;  %614 = vmatpush1.bf16.msra.mxu1 %v613_v63  ;;  %v123_v21 = vld [vmem:[#allocation5 + $0x148] sm:$0xff]  ;;  %v125_v22 = vld [vmem:[#allocation5 + $0x158] sm:$0xff]  ;;  %v623_v24 = vpack.c.bf16 %v250_v17, %v248_v16  ;;  %v247_v25 = vld [vmem:[#allocation7 + $0x80] sm:$0xff]  ;;  %v581_v27 = vpack.c.bf16 %v120_v20, %v118_v19 }
  0x5f   :  { %564 = vmatprep.subr.bf16.mxu0 %v563_v32  ;;  %616 = vmatprep.subr.bf16.mxu1 %v615_v0  ;;  %v249_v26 = vld [vmem:[#allocation7 + $0x90] sm:$0xff]  ;;  %v252_v28 = vld [vmem:[#allocation7 + $0xa8] sm:$0xff]  ;;  %v254_v29 = vld [vmem:[#allocation7 + $0xb8] sm:$0xff]  ;;  %v583_v30 = vpack.c.bf16 %v125_v22, %v123_v21 }
  0x60   :  { %v122_v31 = vld [vmem:[#allocation5 + $0x140] sm:$0xff]  ;;  %v124_v32 = vld [vmem:[#allocation5 + $0x150] sm:$0xff]  ;;  %v127_v33 = vld [vmem:[#allocation5 + $0x168] sm:$0xff]  ;;  %v625_v35 = vpack.c.bf16 %v249_v26, %v247_v25  ;;  %v627_v36 = vpack.c.bf16 %v254_v29, %v252_v28 }
  0x61   :  { %v129_v34 = vld [vmem:[#allocation5 + $0x178] sm:$0xff]  ;;  %v253_v38 = vld [vmem:[#allocation7 + $0xb0] sm:$0xff]  ;;  %v585_v39 = vpack.c.bf16 %v124_v32, %v122_v31  ;;  %v126_v43 = vld [vmem:[#allocation5 + $0x160] sm:$0xff] }
  0x62   :  { %566 = vmatpush1.bf16.msra.mxu0 %v565_v37  ;;  %618 = vmatpush1.bf16.msra.mxu1 %v617_v11  ;;  %v251_v37 = vld [vmem:[#allocation7 + $0xa0] sm:$0xff]  ;;  %v258_v41 = vld [vmem:[#allocation7 + $0xd8] sm:$0xff]  ;;  %v587_v42 = vpack.c.bf16 %v129_v34, %v127_v33  ;;  %v128_v44 = vld [vmem:[#allocation5 + $0x170] sm:$0xff] }
  0x63   :  { %568 = vmatprep.subr.bf16.mxu0 %v567_v40  ;;  %620 = vmatprep.subr.bf16.mxu1 %v619_v12  ;;  %v256_v40 = vld [vmem:[#allocation7 + $0xc8] sm:$0xff]  ;;  %v133_v46 = vld [vmem:[#allocation5 + $0x198] sm:$0xff]  ;;  %v629_v47 = vpack.c.bf16 %v253_v38, %v251_v37  ;;  %v255_v49 = vld [vmem:[#allocation7 + $0xc0] sm:$0xff] }
  0x64   :  { %v131_v45 = vld [vmem:[#allocation5 + $0x188] sm:$0xff]  ;;  %v631_v48 = vpack.c.bf16 %v258_v41, %v256_v40  ;;  %v257_v50 = vld [vmem:[#allocation7 + $0xd0] sm:$0xff]  ;;  %v262_v53 = vld [vmem:[#allocation7 + $0xf8] sm:$0xff] }
  0x65   :  { %v260_v52 = vld [vmem:[#allocation7 + $0xe8] sm:$0xff]  ;;  %v591_v54 = vpack.c.bf16 %v133_v46, %v131_v45  ;;  %v130_v55 = vld [vmem:[#allocation5 + $0x180] sm:$0xff]  ;;  %v132_v56 = vld [vmem:[#allocation5 + $0x190] sm:$0xff]  ;;  %v633_v59 = vpack.c.bf16 %v257_v50, %v255_v49 }
  0x66   :  { %570 = vmatpush1.bf16.msra.mxu0 %v569_v51  ;;  %622 = vmatpush1.bf16.msra.mxu1 %v621_v23  ;;  %v589_v51 = vpack.c.bf16 %v128_v44, %v126_v43  ;;  %v137_v58 = vld [vmem:[#allocation5 + $0x1b8] sm:$0xff]  ;;  %v635_v60 = vpack.c.bf16 %v262_v53, %v260_v52  ;;  %v259_v61 = vld [vmem:[#allocation7 + $0xe0] sm:$0xff]  ;;  %v261_v62 = vld [vmem:[#allocation7 + $0xf0] sm:$0xff]  ;;  %v593_v63 = vpack.c.bf16 %v132_v56, %v130_v55 }
  0x67   :  { %572 = vmatprep.subr.bf16.mxu0 %v571_v57  ;;  %624 = vmatprep.subr.bf16.mxu1 %v623_v24  ;;  %v135_v57 = vld [vmem:[#allocation5 + $0x1a8] sm:$0xff]  ;;  %v266_v1 = vld [vmem:[#allocation7 + $0x118] sm:$0xff]  ;;  %v136_v4 = vld [vmem:[#allocation5 + $0x1b0] sm:$0xff]  ;;  %v637_v7 = vpack.c.bf16 %v261_v62, %v259_v61 }
  0x68   :  { %v264_v0 = vld [vmem:[#allocation7 + $0x108] sm:$0xff]  ;;  %v595_v2 = vpack.c.bf16 %v137_v58, %v135_v57  ;;  %v263_v9 = vld [vmem:[#allocation7 + $0x100] sm:$0xff]  ;;  %v265_v10 = vld [vmem:[#allocation7 + $0x110] sm:$0xff] }
  0x69   :  { %v139_v5 = vld [vmem:[#allocation5 + $0x1c8] sm:$0xff]  ;;  %v639_v8 = vpack.c.bf16 %v266_v1, %v264_v0  ;;  %v270_v13 = vld [vmem:[#allocation7 + $0x138] sm:$0xff]  ;;  %v140_v16 = vld [vmem:[#allocation5 + $0x1d0] sm:$0xff]  ;;  %v641_v19 = vpack.c.bf16 %v265_v10, %v263_v9 }
  0x6a   :  { %574 = vmatpush1.bf16.msra.mxu0 %v573_v3  ;;  %626 = vmatpush1.bf16.msra.mxu1 %v625_v35  ;;  %v134_v3 = vld [vmem:[#allocation5 + $0x1a0] sm:$0xff]  ;;  %v268_v12 = vld [vmem:[#allocation7 + $0x128] sm:$0xff]  ;;  %v269_v22 = vld [vmem:[#allocation7 + $0x130] sm:$0xff] }
  0x6b   :  { %576 = vmatprep.subr.bf16.mxu0 %v575_v6  ;;  %628 = vmatprep.subr.bf16.mxu1 %v627_v36  ;;  %v141_v6 = vld [vmem:[#allocation5 + $0x1d8] sm:$0xff]  ;;  %v597_v11 = vpack.c.bf16 %v136_v4, %v134_v3  ;;  %v143_v17 = vld [vmem:[#allocation5 + $0x1e8] sm:$0xff]  ;;  %v643_v20 = vpack.c.bf16 %v270_v13, %v268_v12  ;;  %v267_v21 = vld [vmem:[#allocation7 + $0x120] sm:$0xff] }
  0x6c   :  { %v599_v14 = vpack.c.bf16 %v141_v6, %v139_v5  ;;  %v272_v24 = vld [vmem:[#allocation7 + $0x148] sm:$0xff]  ;;  %v274_v25 = vld [vmem:[#allocation7 + $0x158] sm:$0xff]  ;;  %v144_v28 = vld [vmem:[#allocation5 + $0x1f0] sm:$0xff]  ;;  %v645_v29 = vpack.c.bf16 %v269_v22, %v267_v21 }
  0x6d   :  { %v271_v31 = vld [vmem:[#allocation7 + $0x140] sm:$0xff]  ;;  %v273_v32 = vld [vmem:[#allocation7 + $0x150] sm:$0xff]  ;;  %v276_v34 = vld [vmem:[#allocation7 + $0x168] sm:$0xff] }
  0x6e   :  { %578 = vmatpush1.bf16.msra.mxu0 %v577_v15  ;;  %630 = vmatpush1.bf16.msra.mxu1 %v629_v47  ;;  %v138_v15 = vld [vmem:[#allocation5 + $0x1c0] sm:$0xff]  ;;  %v278_v35 = vld [vmem:[#allocation7 + $0x178] sm:$0xff]  ;;  %v649_v36 = vpack.c.bf16 %v273_v32, %v271_v31  ;;  %v80_v40 = vld [vmem:[#allocation2] sm:$0xff] }
  0x6f   :  { %580 = vmatprep.subr.bf16.mxu0 %v579_v18  ;;  %632 = vmatprep.subr.bf16.mxu1 %v631_v48  ;;  %v145_v18 = vld [vmem:[#allocation5 + $0x1f8] sm:$0xff]  ;;  %v601_v23 = vpack.c.bf16 %v140_v16, %v138_v15  ;;  %v651_v37 = vpack.c.bf16 %v278_v35, %v276_v34  ;;  %v275_v38 = vld [vmem:[#allocation7 + $0x160] sm:$0xff]  ;;  %v281_v46 = vld [vmem:[#allocation7 + $0x190] sm:$0xff] }
  0x70   :  { %v603_v26 = vpack.c.bf16 %v145_v18, %v143_v17  ;;  %v282_v43 = vld [vmem:[#allocation7 + $0x198] sm:$0xff]  ;;  %v279_v45 = vld [vmem:[#allocation7 + $0x180] sm:$0xff]  ;;  %v284_v48 = vld [vmem:[#allocation7 + $0x1a8] sm:$0xff] }
  0x71   :  { %v657_v47 = vpack.c.bf16 %v281_v46, %v279_v45  ;;  %v286_v49 = vld [vmem:[#allocation7 + $0x1b8] sm:$0xff]  ;;  %v285_v52 = vld [vmem:[#allocation7 + $0x1b0] sm:$0xff]  ;;  %v287_v56 = vld [vmem:[#allocation7 + $0x1c0] sm:$0xff] }
  0x72   :  { %582 = vmatpush1.bf16.msra.mxu0 %v581_v27  ;;  %634 = vmatpush1.bf16.msra.mxu1 %v633_v59  ;;  %v142_v27 = vld [vmem:[#allocation5 + $0x1e0] sm:$0xff]  ;;  %v659_v50 = vpack.c.bf16 %v286_v49, %v284_v48  ;;  %v290_v55 = vld [vmem:[#allocation7 + $0x1d8] sm:$0xff]  ;;  %v289_v58 = vld [vmem:[#allocation7 + $0x1d0] sm:$0xff] }
  0x73   :  { %584 = vmatprep.subr.bf16.mxu0 %v583_v30  ;;  %636 = vmatprep.subr.bf16.mxu1 %v635_v60  ;;  %v647_v30 = vpack.c.bf16 %v274_v25, %v272_v24  ;;  %v605_v33 = vpack.c.bf16 %v144_v28, %v142_v27  ;;  %v292_v59 = vld [vmem:[#allocation7 + $0x1e8] sm:$0xff]  ;;  %v294_v60 = vld [vmem:[#allocation7 + $0x1f8] sm:$0xff]  ;;  %v665_v61 = vpack.c.bf16 %v289_v58, %v287_v56  ;;  %v293_v0 = vld [vmem:[#allocation7 + $0x1f0] sm:$0xff] }
  0x74   :  { %v667_v62 = vpack.c.bf16 %v294_v60, %v292_v59  ;;  %v397_v3 = vld [vmem:[#allocation8 + $0x88] sm:$0xff]  ;;  %v380_v4 = vld [vmem:[#allocation8] sm:$0xff]  ;;  %v383_v12 = vld [vmem:[#allocation8 + $0x18] sm:$0xff] }
  0x75   :  { %v381_v6 = vld [vmem:[#allocation8 + $0x8] sm:$0xff]  ;;  %v400_v13 = vld [vmem:[#allocation8 + $0xa0] sm:$0xff]  ;;  %v387_v24 = vld [vmem:[#allocation8 + $0x38] sm:$0xff] }
  0x76   :  { %586 = vmatpush1.bf16.msra.mxu0 %v585_v39  ;;  %638 = vmatpush1.bf16.msra.mxu1 %v637_v7  ;;  %v277_v39 = vld [vmem:[#allocation7 + $0x170] sm:$0xff]  ;;  %v673_v9 = vpack.c.bf16 %v381_v6, %v380_v4  ;;  %v384_v17 = vld [vmem:[#allocation8 + $0x20] sm:$0xff]  ;;  %v385_v18 = vld [vmem:[#allocation8 + $0x28] sm:$0xff] }
  0x77   :  { %588 = vmatprep.subr.bf16.mxu0 %v587_v42  ;;  %640 = vmatprep.subr.bf16.mxu1 %v639_v8  ;;  %v653_v41 = vpack.c.bf16 %v277_v39, %v275_v38  ;;  %v280_v42 = vld [vmem:[#allocation7 + $0x188] sm:$0xff]  ;;  %v398_v7 = vld [vmem:[#allocation8 + $0x90] sm:$0xff]  ;;  %v399_v8 = vld [vmem:[#allocation8 + $0x98] sm:$0xff]  ;;  %v681_v21 = vpack.c.bf16 %v385_v18, %v384_v17 }
  0x78   :  { %v655_v44 = vpack.c.bf16 %v282_v43, %v280_v42  ;;  %v675_v10 = vpack.c.bf16 %v399_v8, %v398_v7  ;;  %v404_v39 = vld [vmem:[#allocation8 + $0xc0] sm:$0xff]  ;;  %v389_v43 = vld [vmem:[#allocation8 + $0x48] sm:$0xff]  ;;  %v406_v45 = vld [vmem:[#allocation8 + $0xd0] sm:$0xff] }
  0x79   :  { %v388_v42 = vld [vmem:[#allocation8 + $0x40] sm:$0xff]  ;;  %v407_v46 = vld [vmem:[#allocation8 + $0xd8] sm:$0xff]  ;;  %v390_v48 = vld [vmem:[#allocation8 + $0x50] sm:$0xff] }
  0x7a   :  { %590 = vmatpush1.bf16.msra.mxu0 %v589_v51  ;;  %642 = vmatpush1.bf16.msra.mxu1 %v641_v19  ;;  %v283_v51 = vld [vmem:[#allocation7 + $0x1a0] sm:$0xff]  ;;  %v402_v19 = vld [vmem:[#allocation8 + $0xb0] sm:$0xff]  ;;  %v391_v49 = vld [vmem:[#allocation8 + $0x58] sm:$0xff] }
  0x7b   :  { %592 = vmatprep.subr.bf16.mxu0 %v591_v54  ;;  %644 = vmatprep.subr.bf16.mxu1 %v643_v20  ;;  %v661_v53 = vpack.c.bf16 %v285_v52, %v283_v51  ;;  %v288_v54 = vld [vmem:[#allocation7 + $0x1c8] sm:$0xff]  ;;  %v403_v20 = vld [vmem:[#allocation8 + $0xb8] sm:$0xff]  ;;  %v408_v51 = vld [vmem:[#allocation8 + $0xe0] sm:$0xff] }
  0x7c   :  { %v663_v57 = vpack.c.bf16 %v290_v55, %v288_v54  ;;  %v683_v22 = vpack.c.bf16 %v403_v20, %v402_v19  ;;  %v409_v52 = vld [vmem:[#allocation8 + $0xe8] sm:$0xff]  ;;  %v410_v56 = vld [vmem:[#allocation8 + $0xf0] sm:$0xff] }
  0x7d   :  { %v695_v54 = vpack.c.bf16 %v409_v52, %v408_v51  ;;  %v393_v55 = vld [vmem:[#allocation8 + $0x68] sm:$0xff]  ;;  %v394_v60 = vld [vmem:[#allocation8 + $0x70] sm:$0xff] }
  0x7e   :  { %594 = vmatpush1.bf16.msra.mxu0 %v593_v63  ;;  %646 = vmatpush1.bf16.msra.mxu1 %v645_v29  ;;  %v291_v63 = vld [vmem:[#allocation7 + $0x1e0] sm:$0xff]  ;;  %v146_v29 = vld [vmem:[%s964_s2] sm:$0x3] }
  0x7f   :  { %596 = vmatprep.subr.bf16.mxu0 %v595_v2  ;;  %648 = vmatprep.subr.bf16.mxu1 %v647_v30  ;;  %v669_v1 = vpack.c.bf16 %v293_v0, %v291_v63  ;;  %v396_v2 = vld [vmem:[#allocation8 + $0x80] sm:$0xff]  ;;  %v295_v63 = vld [vmem:[%s966_s4] sm:$0x3]  ;;  %s496_s4 = sshll.u32 %s846_s30, 4  ;;  %s497_s4 = int_to_ptr.vmem [resolvable:$true] %s496_s4 }
  0x80   :  { %v671_v5 = vpack.c.bf16 %v397_v3, %v396_v2  ;;  %s808_s8 = scalar_lea.vmem %s497_s4, 128  ;;  %p813_p5 = scmp.lt.s32.totalorder %s497_s4, %s497_s4 }
  0x81   :  { %p809_p4 = scmp.ne.s32.totalorder %s497_s4, %s808_s8  ;;  %p814_p6 = scmp.lt.s32.totalorder %s808_s8, %s808_s8 }
  0x82   :  { %598 = vmatpush1.bf16.msra.mxu0 %v597_v11  ;;  %650 = vmatpush1.bf16.msra.mxu1 %v649_v36  ;;  %v382_v11 = vld [vmem:[#allocation8 + $0x10] sm:$0xff] }
  0x83   :  { %600 = vmatprep.subr.bf16.mxu0 %v599_v14  ;;  %652 = vmatprep.subr.bf16.mxu1 %v651_v37  ;;  %v401_v14 = vld [vmem:[#allocation8 + $0xa8] sm:$0xff]  ;;  %v677_v15 = vpack.c.bf16 %v383_v12, %v382_v11  ;;  %p815_p7 = por %p814_p6, %p813_p5 }
  0x84   :  { %v679_v16 = vpack.c.bf16 %v401_v14, %v400_v13 }
  0x85   :  { %p816_p8 = pnand %p815_p7, %p809_p4 }
  0x86   :  { %602 = vmatpush1.bf16.msra.mxu0 %v601_v23  ;;  %654 = vmatpush1.bf16.msra.mxu1 %v653_v41  ;;  %v386_v23 = vld [vmem:[#allocation8 + $0x30] sm:$0xff] }
  0x87   :  { %604 = vmatprep.subr.bf16.mxu0 %v603_v26  ;;  %656 = vmatprep.subr.bf16.mxu1 %v655_v44  ;;  %v685_v25 = vpack.c.bf16 %v387_v24, %v386_v23  ;;  %v148_v26 = vlaneseq  ;;  %v689_v44 = vpack.c.bf16 %v389_v43, %v388_v42 }
  0x89   :  { %v149_v27 = vshrl.u32 %v148_v26, 7 }
  0x8a   :  { %606 = vmatpush1.bf16.msra.mxu0 %v605_v33  ;;  %658 = vmatpush1.bf16.msra.mxu1 %v657_v47  ;;  %v691_v47 = vpack.c.bf16 %v407_v46, %v406_v45 }
  0x8b   :  { %660 = vmatprep.subr.bf16.mxu1 %v659_v50  ;;  %672 = vmatprep.subr.bf16.mxu0 %v671_v5  ;;  %v150_v28 = vsub.s32 0, %v149_v27  ;;  %v154_v30 = vsub.s32 1, %v149_v27  ;;  %v693_v50 = vpack.c.bf16 %v391_v49, %v390_v48 }
  0x8d   :  { %223 = vmatmul.mubr.f32.vlgmr.msra.gmra.mrb[0].mxu0 %v80_v40  ;;  %v151_v31 = vrot.slane %v146_v29, %v150_v28  ;;  %v155_v32 = vrot.slane %v146_v29, %v154_v30  ;;  %v405_v40 = vld [vmem:[#allocation8 + $0xc8] sm:$0xff]  ;;  %v300_v0 = vrot.slane %v295_v63, %v150_v28 }
  0x8e   :  { %662 = vmatpush1.bf16.msra.mxu1 %v661_v53  ;;  %674 = vmatpush3.bf16.msra.mxu0 %v673_v9  ;;  %v687_v41 = vpack.c.bf16 %v405_v40, %v404_v39  ;;  %v392_v53 = vld [vmem:[#allocation8 + $0x60] sm:$0xff]  ;;  %v507_v9 = vld [vmem:[%s968_s6] ss:$0 sm:$0xff] }
  0x8f   :  { %664 = vmatprep.subr.bf16.mxu1 %v663_v57  ;;  %676 = vmatprep.subr.bf16.mxu0 %v675_v10  ;;  %v411_v57 = vld [vmem:[#allocation8 + $0xf8] sm:$0xff]  ;;  %v697_v58 = vpack.c.bf16 %v393_v55, %v392_v53 }
  0x90   :  { %v699_v59 = vpack.c.bf16 %v411_v57, %v410_v56 }
  0x92   :  { %666 = vmatpush1.bf16.msra.mxu1 %v665_v61  ;;  %678 = vmatpush3.bf16.msra.mxu0 %v677_v15  ;;  %v395_v61 = vld [vmem:[#allocation8 + $0x78] sm:$0xff] }
  0x93   :  { %668 = vmatprep.subr.bf16.mxu1 %v667_v62  ;;  %680 = vmatprep.subr.bf16.mxu0 %v679_v16  ;;  %v701_v62 = vpack.c.bf16 %v395_v61, %v394_v60 }
  0x96   :  { %670 = vmatpush1.bf16.msra.mxu1 %v669_v1  ;;  %682 = vmatpush3.bf16.msra.mxu0 %v681_v21  ;;  %v304_v1 = vrot.slane %v295_v63, %v154_v30 }
  0x97   :  { %684 = vmatprep.subr.bf16.mxu0 %v683_v22 }
  0x9a   :  { %686 = vmatpush3.bf16.msra.mxu0 %v685_v25 }
  0x9b   :  { %688 = vmatprep.subr.bf16.mxu0 %v687_v41 }
  0x9e   :  { %690 = vmatpush3.bf16.msra.mxu0 %v689_v44 }
  0x9f   :  { %692 = vmatprep.subr.bf16.mxu0 %v691_v47 }
  0xa2   :  { %694 = vmatpush3.bf16.msra.mxu0 %v693_v50 }
  0xa3   :  { %696 = vmatprep.subr.bf16.mxu0 %v695_v54 }
  0xa6   :  { %698 = vmatpush3.bf16.msra.mxu0 %v697_v58 }
  0xa7   :  { %700 = vmatprep.subr.bf16.mxu0 %v699_v59 }
  0xaa   :  { %702 = vmatpush3.bf16.msra.mxu0 %v701_v62 }
 0x160   :  { %v224_v33 = vpop.f32.mrb[0].mxu0 }
 0x161   :  { %v225_v34 = vadd.f32 %v224_v33, %v151_v31  ;;  %v226_v35 = vpop.f32.mrb[1].mxu0 }
 0x162   :  { %v227_v36 = vadd.f32 %v226_v35, %v155_v32 }
 0x164   :  { %712 = vtanh.f32 %v227_v36 }
 0x165   :  { %714 = vtanh.f32 %v225_v34 }
 0x16e   :  { %v713_v37 = vpop.eup %712 }
 0x16f   :  { %v715_v38 = vpop.eup %714  ;;  %371 = vmatprep.mubr.f32.mxu1 %v713_v37 }
 0x170   :  { %372 = vmatmul.mubr.f32.vlgmr.msra.gmra.mrb[0].mxu1 %v715_v38 }
 0x243   :  { %v373_v2 = vpop.f32.mrb[0].mxu1 }
 0x244   :  { %v374_v3 = vadd.f32 %v373_v2, %v300_v0  ;;  %v375_v4 = vpop.f32.mrb[1].mxu1 }
 0x245   :  { %v376_v5 = vadd.f32 %v375_v4, %v304_v1 }
 0x247   :  { %716 = vtanh.f32 %v376_v5 }
 0x248   :  { %718 = vtanh.f32 %v374_v3 }
 0x251   :  { %v717_v6 = vpop.eup %716 }
 0x252   :  { %v719_v7 = vpop.eup %718  ;;  %483 = vmatprep.mubr.f32.mxu0 %v717_v6 }
 0x253   :  { %484 = vmatmul.mubr.f32.vlgmr.msra.gmra.mrb[2].mxu0 %v719_v7 }
 0x326   :  { %v540_v8 = vpop.f32.mrb[2].mxu0 }
 0x327   :  { %v541_v10 = vpop.f32.mrb[3].mxu0 }
 0x328   :  { %v542_v11 = vadd.f32 %v541_v10, %v540_v8 }
 0x32a   :  { %v486_v12 = vadd.f32 %v542_v11, %v507_v9 }
 0x32c   :  { %489 = vst [vmem:[#allocation10] sm:$0xff] %v486_v12 }
 0x32d   :  { %819 = shalt.err (!%p816_p8)
}
 0x32e   :  { %s820_s13 = scalar_lea.hbm %s969_s7, 128 }
 0x32f   :  { %p821_p9 = scmp.ne.s32.totalorder %s969_s7, %s820_s13  ;;  %p824_p10 = scmp.lt.u32.totalorder %s820_s13, %s969_s7 }
 0x331   :  { %p826_p11 = pnand %p824_p10, %p821_p9 }
 0x333   :  { %829 = shalt.err (!%p826_p11)
}
 0x334   :  { %499 = dma.vmem_to_hbm [thread:$0]  %s497_s4, 128, %s969_s7, [#allocation4]  }
 0x335   :  { %836 = dma.done.wait [#allocation4], 128  }
 0x336   :  { %837 = vsyncadd [#allocation4], 4294967168 }
 0x337   :  { %503 = vsyncpa [#allocation3], 1 }
 0x338   :  { %504 = vsyncpa [#allocation6], 1 }
 0x339   :  { %505 = vsyncpa [#allocation9], 1 }
 0x33a   :  { %506 = vsyncpa [#allocation4], 1 }

</bundles_post_ra>
